<compile_context>
chip_gen: v7x
topology: tpu7x:2x2x1
jax: 0.10.0
libtpu: 0.0.40
codegen_flags: <defaults>
</compile_context>

<pallas_src>
import jax
import jax.numpy as jnp
from jax import lax
from jax.experimental import pallas as pl
from jax.experimental.pallas import tpu as pltpu


def mlp_kernel(x_ref, w1_ref, b1_ref, w2_ref, b2_ref,
               w3_ref, b3_ref, w4_ref, b4_ref, o_ref):
    # x tile: (TB, 30) batch-major.
    x = x_ref[...]

    # Layer 1 in NT form: h1 = W1 @ x^T  -> (20, TB) feature-major
    # (same dot_general pattern as q @ k^T in the TPU flash-attention kernel).
    h1 = lax.dot_general(
        w1_ref[...], x, (((1,), (1,)), ((), ())),
        preferred_element_type=jnp.float32) + b1_ref[...]
    h1 = jnp.maximum(h1, 0.0)

    # Layer 2: (10,20) @ (20,TB) -> (10, TB)
    h2 = jnp.dot(w2_ref[...], h1,
                 preferred_element_type=jnp.float32) + b2_ref[...]
    h2 = jnp.maximum(h2, 0.0)

    # Layer 3: (5,10) @ (10,TB) -> (5, TB)
    h3 = jnp.dot(w3_ref[...], h2,
                 preferred_element_type=jnp.float32) + b3_ref[...]
    h3 = jnp.maximum(h3, 0.0)

    # Classifier: (2,5) @ (5,TB) -> (2, TB), sigmoid, lane-dense store.
    logits = jnp.dot(w4_ref[...], h3,
                     preferred_element_type=jnp.float32) + b4_ref[...]
    o_ref[...] = jax.nn.sigmoid(logits).astype(o_ref.dtype)


def _round_up(n, m):
    return ((n + m - 1) // m) * m


def mlp_forward(x, params, *, tb=2048):
    """x: [B, 30] float32. params: PyTorch-layout weights [out,in], biases [out,1]."""
    B, F = x.shape
    tb = _round_up(tb, 128)            # lane-dense output tiles when multi-tile
    if B >= tb:
        TB = tb                        # large batch: fixed tile, multiple of 128
    else:
        TB = _round_up(B, 8)           # small batch: single tile over padded batch
    B_pad = _round_up(B, TB)
    if B_pad != B:
        x = jnp.pad(x, ((0, B_pad - B), (0, 0)))
    num_tiles = B_pad // TB

    def resident_spec(arr):
        # Full-array block, pinned in VMEM for every grid step.
        # (Explicit per-array closure: no late-binding on the loop variable.)
        return pl.BlockSpec(arr.shape, lambda i: (0, 0))

    args = (x,
            params["w1"], params["b1"], params["w2"], params["b2"],
            params["w3"], params["b3"], params["w4"], params["b4"])

    in_specs = [pl.BlockSpec((TB, F), lambda i: (i, 0))]
    in_specs += [resident_spec(a) for a in args[1:]]
    # Output is feature-major [2, B_pad] so the block's last dim (batch) is
    # lane-dense; transposed back to [B, 2] in the wrapper.
    out_spec = pl.BlockSpec((2, TB), lambda i: (0, i))

    out_t = pl.pallas_call(
        mlp_kernel,
        out_shape=jax.ShapeDtypeStruct((2, B_pad), jnp.float32),
        grid=(num_tiles,),
        in_specs=in_specs,
        out_specs=out_spec,
        compiler_params=pltpu.CompilerParams(
            dimension_semantics=("parallel",)),
    )(*args)

    return out_t[:, :B].T


def init_params(key):
    """Deterministic init mimicking PyTorch nn.Linear default
    (uniform(-1/sqrt(fan_in), 1/sqrt(fan_in))). PyTorch layout: W [out, in]."""
    dims = [(30, 20), (20, 10), (10, 5), (5, 2)]
    params = {}
    for i, (fan_in, fan_out) in enumerate(dims, start=1):
        key, kw, kb = jax.random.split(key, 3)
        bound = 1.0 / jnp.sqrt(jnp.float32(fan_in))
        params[f"w{i}"] = jax.random.uniform(
            kw, (fan_out, fan_in), jnp.float32, -bound, bound)
        params[f"b{i}"] = jax.random.uniform(
            kb, (fan_out, 1), jnp.float32, -bound, bound)
    return params


def reference_forward(x, p):
    h = jnp.maximum(x @ p["w1"].T + p["b1"].T, 0.0)
    h = jnp.maximum(h @ p["w2"].T + p["b2"].T, 0.0)
    h = jnp.maximum(h @ p["w3"].T + p["b3"].T, 0.0)
    return jax.nn.sigmoid(h @ p["w4"].T + p["b4"].T)


if __name__ == "__main__":
    key = jax.random.PRNGKey(0)
    key, kx = jax.random.split(key)
    params = init_params(key)

    # Small-shape smoke test (single tile, padded batch).
    B = 4
    x = jax.random.normal(kx, (B, 30), jnp.float32)
    out = jax.block_until_ready(mlp_forward(x, params))
    ref = reference_forward(x, params)
    assert out.shape == (B, 2)
    assert jnp.allclose(out, ref, atol=1e-5, rtol=1e-5), "mismatch vs reference (B=4)"

    # Multi-tile path: exercises the batch grid, zero-padding and the
    # "parallel" batch axis (megacore sharding on v7x).
    key, kx2 = jax.random.split(key)
    B2 = 300
    x2 = jax.random.normal(kx2, (B2, 30), jnp.float32)
    out2 = jax.block_until_ready(mlp_forward(x2, params, tb=128))
    ref2 = reference_forward(x2, params)
    assert out2.shape == (B2, 2)
    assert jnp.allclose(out2, ref2, atol=1e-5, rtol=1e-5), "mismatch vs reference (B=300)"

    print("KERNEL_OK")
</pallas_src>

<mosaic_0001>
module attributes {stable_mosaic.version = 11 : i64} {
  func.func @mlp_kernel(%arg0: i32, %arg1: memref<8x30xf32, #tpu.memory_space<vmem>>, %arg2: memref<20x30xf32, #tpu.memory_space<vmem>>, %arg3: memref<20x1xf32, #tpu.memory_space<vmem>>, %arg4: memref<10x20xf32, #tpu.memory_space<vmem>>, %arg5: memref<10x1xf32, #tpu.memory_space<vmem>>, %arg6: memref<5x10xf32, #tpu.memory_space<vmem>>, %arg7: memref<5x1xf32, #tpu.memory_space<vmem>>, %arg8: memref<2x5xf32, #tpu.memory_space<vmem>>, %arg9: memref<2x1xf32, #tpu.memory_space<vmem>>, %arg10: memref<2x8xf32, #tpu.memory_space<vmem>>) attributes {dimension_semantics = [#tpu.dimension_semantics<parallel>], iteration_bounds = array<i64: 1>, scalar_prefetch = 0 : i64, scratch_operands = 0 : i64, tpu.core_type = #tpu.core_type<tc>, window_params = [{transform_indices = @transform_0, window_bounds = array<i64: 8, 30>}, {pipeline_mode = #tpu.pipeline_mode<synchronous>, transform_indices = @transform_1, window_bounds = array<i64: 20, 30>}, {pipeline_mode = #tpu.pipeline_mode<synchronous>, transform_indices = @transform_2, window_bounds = array<i64: 20, 1>}, {pipeline_mode = #tpu.pipeline_mode<synchronous>, transform_indices = @transform_3, window_bounds = array<i64: 10, 20>}, {pipeline_mode = #tpu.pipeline_mode<synchronous>, transform_indices = @transform_4, window_bounds = array<i64: 10, 1>}, {pipeline_mode = #tpu.pipeline_mode<synchronous>, transform_indices = @transform_5, window_bounds = array<i64: 5, 10>}, {pipeline_mode = #tpu.pipeline_mode<synchronous>, transform_indices = @transform_6, window_bounds = array<i64: 5, 1>}, {pipeline_mode = #tpu.pipeline_mode<synchronous>, transform_indices = @transform_7, window_bounds = array<i64: 2, 5>}, {pipeline_mode = #tpu.pipeline_mode<synchronous>, transform_indices = @transform_8, window_bounds = array<i64: 2, 1>}, {transform_indices = @transform_9, window_bounds = array<i64: 2, 8>}]} {
    %c0 = arith.constant 0 : index
    %c0_0 = arith.constant 0 : index
    %0 = vector.load %arg1[%c0, %c0_0] : memref<8x30xf32, #tpu.memory_space<vmem>>, vector<8x30xf32>
    %c0_1 = arith.constant 0 : index
    %c0_2 = arith.constant 0 : index
    %1 = vector.load %arg2[%c0_1, %c0_2] : memref<20x30xf32, #tpu.memory_space<vmem>>, vector<20x30xf32>
    %cst = arith.constant dense<0.000000e+00> : vector<20x8xf32>
    %2 = tpu.matmul %1, %0, %cst {dimension_numbers = #tpu.dot_dimension_numbers<[1], [1], [0], [0], [0, 0, 1, 0], [], []>} : vector<20x30xf32>, vector<8x30xf32>, vector<20x8xf32> -> vector<20x8xf32>
    %c0_3 = arith.constant 0 : index
    %c0_4 = arith.constant 0 : index
    %3 = vector.load %arg3[%c0_3, %c0_4] : memref<20x1xf32, #tpu.memory_space<vmem>>, vector<20x1xf32>
    %4 = vector.broadcast %3 : vector<20x1xf32> to vector<20x8xf32>
    %5 = arith.addf %2, %4 : vector<20x8xf32>
    %cst_5 = arith.constant 0.000000e+00 : f32
    %6 = vector.broadcast %cst_5 : f32 to vector<20x8xf32>
    %7 = arith.maximumf %5, %6 : vector<20x8xf32>
    %c0_6 = arith.constant 0 : index
    %c0_7 = arith.constant 0 : index
    %8 = vector.load %arg4[%c0_6, %c0_7] : memref<10x20xf32, #tpu.memory_space<vmem>>, vector<10x20xf32>
    %cst_8 = arith.constant dense<0.000000e+00> : vector<10x8xf32>
    %9 = tpu.matmul %8, %7, %cst_8 {dimension_numbers = #tpu.dot_dimension_numbers<[1], [0], [0], [1], [0, 0, 1, 1], [], []>} : vector<10x20xf32>, vector<20x8xf32>, vector<10x8xf32> -> vector<10x8xf32>
    %c0_9 = arith.constant 0 : index
    %c0_10 = arith.constant 0 : index
    %10 = vector.load %arg5[%c0_9, %c0_10] : memref<10x1xf32, #tpu.memory_space<vmem>>, vector<10x1xf32>
    %11 = vector.broadcast %10 : vector<10x1xf32> to vector<10x8xf32>
    %12 = arith.addf %9, %11 : vector<10x8xf32>
    %cst_11 = arith.constant 0.000000e+00 : f32
    %13 = vector.broadcast %cst_11 : f32 to vector<10x8xf32>
    %14 = arith.maximumf %12, %13 : vector<10x8xf32>
    %c0_12 = arith.constant 0 : index
    %c0_13 = arith.constant 0 : index
    %15 = vector.load %arg6[%c0_12, %c0_13] : memref<5x10xf32, #tpu.memory_space<vmem>>, vector<5x10xf32>
    %cst_14 = arith.constant dense<0.000000e+00> : vector<5x8xf32>
    %16 = tpu.matmul %15, %14, %cst_14 {dimension_numbers = #tpu.dot_dimension_numbers<[1], [0], [0], [1], [0, 0, 1, 1], [], []>} : vector<5x10xf32>, vector<10x8xf32>, vector<5x8xf32> -> vector<5x8xf32>
    %c0_15 = arith.constant 0 : index
    %c0_16 = arith.constant 0 : index
    %17 = vector.load %arg7[%c0_15, %c0_16] : memref<5x1xf32, #tpu.memory_space<vmem>>, vector<5x1xf32>
    %18 = vector.broadcast %17 : vector<5x1xf32> to vector<5x8xf32>
    %19 = arith.addf %16, %18 : vector<5x8xf32>
    %cst_17 = arith.constant 0.000000e+00 : f32
    %20 = vector.broadcast %cst_17 : f32 to vector<5x8xf32>
    %21 = arith.maximumf %19, %20 : vector<5x8xf32>
    %c0_18 = arith.constant 0 : index
    %c0_19 = arith.constant 0 : index
    %22 = vector.load %arg8[%c0_18, %c0_19] : memref<2x5xf32, #tpu.memory_space<vmem>>, vector<2x5xf32>
    %cst_20 = arith.constant dense<0.000000e+00> : vector<2x8xf32>
    %23 = tpu.matmul %22, %21, %cst_20 {dimension_numbers = #tpu.dot_dimension_numbers<[1], [0], [0], [1], [0, 0, 1, 1], [], []>} : vector<2x5xf32>, vector<5x8xf32>, vector<2x8xf32> -> vector<2x8xf32>
    %c0_21 = arith.constant 0 : index
    %c0_22 = arith.constant 0 : index
    %24 = vector.load %arg9[%c0_21, %c0_22] : memref<2x1xf32, #tpu.memory_space<vmem>>, vector<2x1xf32>
    %25 = vector.broadcast %24 : vector<2x1xf32> to vector<2x8xf32>
    %26 = arith.addf %23, %25 : vector<2x8xf32>
    %27 = arith.negf %26 : vector<2x8xf32>
    %28 = math.exp %27 : vector<2x8xf32>
    %cst_23 = arith.constant 1.000000e+00 : f32
    %29 = vector.broadcast %cst_23 : f32 to vector<2x8xf32>
    %30 = arith.addf %29, %28 : vector<2x8xf32>
    %31 = arith.divf %29, %30 : vector<2x8xf32>
    %c0_24 = arith.constant 0 : index
    %c0_25 = arith.constant 0 : index
    %32 = vector.load %arg10[%c0_24, %c0_25] : memref<2x8xf32, #tpu.memory_space<vmem>>, vector<2x8xf32>
    tpu.vector_store %arg10[%c0_24, %c0_25], %31 {strides = array<i32>} : memref<2x8xf32, #tpu.memory_space<vmem>>, vector<2x8xf32>,
    return
  }
  func.func @transform_0(%arg0: i32) -> (i32, i32) {
    %c0_i32 = arith.constant 0 : i32
    %c0_i32_0 = arith.constant 0 : i32
    return %arg0, %c0_i32 : i32, i32
  }
  func.func @transform_1(%arg0: i32) -> (i32, i32) {
    %c0_i32 = arith.constant 0 : i32
    %c0_i32_0 = arith.constant 0 : i32
    %c0_i32_1 = arith.constant 0 : i32
    return %c0_i32, %c0_i32_0 : i32, i32
  }
  func.func @transform_2(%arg0: i32) -> (i32, i32) {
    %c0_i32 = arith.constant 0 : i32
    %c0_i32_0 = arith.constant 0 : i32
    %c0_i32_1 = arith.constant 0 : i32
    return %c0_i32, %c0_i32_0 : i32, i32
  }
  func.func @transform_3(%arg0: i32) -> (i32, i32) {
    %c0_i32 = arith.constant 0 : i32
    %c0_i32_0 = arith.constant 0 : i32
    %c0_i32_1 = arith.constant 0 : i32
    return %c0_i32, %c0_i32_0 : i32, i32
  }
  func.func @transform_4(%arg0: i32) -> (i32, i32) {
    %c0_i32 = arith.constant 0 : i32
    %c0_i32_0 = arith.constant 0 : i32
    %c0_i32_1 = arith.constant 0 : i32
    return %c0_i32, %c0_i32_0 : i32, i32
  }
  func.func @transform_5(%arg0: i32) -> (i32, i32) {
    %c0_i32 = arith.constant 0 : i32
    %c0_i32_0 = arith.constant 0 : i32
    %c0_i32_1 = arith.constant 0 : i32
    return %c0_i32, %c0_i32_0 : i32, i32
  }
  func.func @transform_6(%arg0: i32) -> (i32, i32) {
    %c0_i32 = arith.constant 0 : i32
    %c0_i32_0 = arith.constant 0 : i32
    %c0_i32_1 = arith.constant 0 : i32
    return %c0_i32, %c0_i32_0 : i32, i32
  }
  func.func @transform_7(%arg0: i32) -> (i32, i32) {
    %c0_i32 = arith.constant 0 : i32
    %c0_i32_0 = arith.constant 0 : i32
    %c0_i32_1 = arith.constant 0 : i32
    return %c0_i32, %c0_i32_0 : i32, i32
  }
  func.func @transform_8(%arg0: i32) -> (i32, i32) {
    %c0_i32 = arith.constant 0 : i32
    %c0_i32_0 = arith.constant 0 : i32
    %c0_i32_1 = arith.constant 0 : i32
    return %c0_i32, %c0_i32_0 : i32, i32
  }
  func.func @transform_9(%arg0: i32) -> (i32, i32) {
    %c0_i32 = arith.constant 0 : i32
    %c0_i32_0 = arith.constant 0 : i32
    return %c0_i32, %arg0 : i32, i32
  }
}

</mosaic_0001>

<bundles_post_ra>
// kernel: tpu_custom_call.1
= control target key start
LH: loop header
LB: loop body
LE: loop exit
PB: predicated region body
PF: predicated region fallthrough
CT: control target
= control target key end

     0   :  { %vm55_vm0 = vcmask 244736   ;;  %v548_v1 = vmov 0.0   ;;  %vm549_vm1 = vmmov 0   ;;  %v550_v4 = vmov 0   ;;  %s679_s0 = inlined_call_operand.vmem [shape: f32[8,30], index: 0, kind: input, shape index: {}]   ;;  %s680_s1 = inlined_call_operand.vmem [shape: f32[20,30], index: 1, kind: input, shape index: {}]   ;;  %s681_s2 = inlined_call_operand.vmem [shape: f32[20,1], index: 2, kind: input, shape index: {}]   ;;  %s682_s3 = inlined_call_operand.vmem [shape: f32[10,20], index: 3, kind: input, shape index: {}]   ;;  %s683_s4 = inlined_call_operand.vmem [shape: f32[10,1], index: 4, kind: input, shape index: {}]   ;;  %s684_s5 = inlined_call_operand.vmem [shape: f32[5,10], index: 5, kind: input, shape index: {}]   ;;  %s685_s6 = inlined_call_operand.vmem [shape: f32[5,1], index: 6, kind: input, shape index: {}]   ;;  %s686_s7 = inlined_call_operand.vmem [shape: f32[2,5], index: 7, kind: input, shape index: {}]   ;;  %s687_s8 = inlined_call_operand.vmem [shape: f32[2,1], index: 8, kind: input, shape index: {}]   ;;  %s688_s9 = inlined_call_operand.hbm [shape: f32[2,8], index: 9, kind: output, shape index: {}]  }
   0x1   :  { %v33_v0 = vld [vmem:[%s679_s0] sm:$0xff]  ;;  %472 = vmatprep.subr.mxu0 %v548_v1  ;;  %474 = vmatprep.mubr.msk.f32.mxu0 %vm549_vm1, %v548_v1  ;;  %v39_v5 = vld [vmem:[%s681_s2 + $0x10] sm:$0xf] }
   0x2   :  { %v37_v2 = vld [vmem:[%s681_s2] sm:$0xff]  ;;  %473 = vmatpush3.xpose.msk.msra.mxu0 %vm55_vm0, %v33_v0  ;;  %518 = vset.pattern.permute.xlu0 %v550_v4 }
   0x3   :  { %v34_v3 = vld [vmem:[%s680_s1] sm:$0xff]  ;;  %42 = vperm.xlu0 %518, %v37_v2   ;;  %519 = vset.pattern.permute.xlu1 %v550_v4 }
   0x4   :  { %14 = vsyncpa [#allocation3], 0  ;;  %v38_v6 = vld [vmem:[%s681_s2 + $0x8] sm:$0xff]  ;;  %52 = vperm.xlu1 %519, %v39_v5   ;;  %v153_v7 = vld [vmem:[%s683_s4] sm:$0xff]  ;;  %vm165_vm2 = vcmask 162816   ;;  %vm172_vm3 = vcmask 1043456  }
   0x5   :  { %475 = vmatmul.mubr.msk.f32.vlgmr.msra.gmra.mrb[0].mxu0 %vm55_vm0, %v34_v3  ;;  %v35_v8 = vld [vmem:[%s680_s1 + $0x8] sm:$0xff]  ;;  %v254_v10 = vld [vmem:[%s685_s6] sm:$0x1f]  ;;  %v36_v11 = vld [vmem:[%s680_s1 + $0x10] sm:$0xf]  ;;  %v551_v31 = vmov 0.0|0.0  }
   0x6   :  { %477 = vmatprep.mubr.msk.f32.mxu0 %vm549_vm1, %v548_v1  ;;  %v154_v9 = vld [vmem:[%s683_s4 + $0x8] sm:$0x3]  ;;  %v340_v12 = vld [vmem:[%s687_s8] sm:$0x3]  ;;  %vm264_vm4 = vcmask 1041408   ;;  %vm552_vm5 = vmmov 1  }
   0x7   :  { %47 = vperm.xlu0 %518, %v38_v6   ;;  %v151_v13 = vld [vmem:[%s682_s3] sm:$0xff]  ;;  %v152_v30 = vld [vmem:[%s682_s3 + $0x8] sm:$0x3]  ;;  %vm510_vm6 = vmpackc.low %vm264_vm4, %vm552_vm5  ;;  %vm260_vm7 = vcmask 80896   ;;  %vm350_vm8 = vcmask 1044480   ;;  %vm346_vm9 = vcmask 39936  }
   0x8   :  { %157 = vperm.xlu1 %519, %v153_v7   ;;  %489 = vmatprep.mubr.msk.f32.mxu1 %vm165_vm2, %v151_v13  ;;  %v253_v41 = vld [vmem:[%s684_s5] sm:$0x1f]  ;;  %s553_s5 = smov [#allocation2]   ;;  %vm430_vm10 = vcmask 58368  }
   0x9   :  { %478 = vmatmul.mubr.msk.f32.gmra.mrb[2].mxu0 %vm55_vm0, %v35_v8  ;;  %v339_v47 = vld [vmem:[%s686_s7] sm:$0x3]  ;;  %s438_s11 = sshll.u32 %s553_s5, 4  ;;  %s439_s11 = int_to_ptr.vmem [resolvable:$true] %s438_s11 }
   0xa   :  { %480 = vmatprep.mubr.msk.f32.mxu0 %vm549_vm1, %v548_v1  ;;  %s524_s12 = scalar_lea.vmem %s439_s11, 32  ;;  %p529_p1 = scmp.lt.s32.totalorder %s439_s11, %s439_s11 }
   0xb   :  { %162 = vperm.xlu0 %518, %v154_v9   ;;  %p525_p0 = scmp.ne.s32.totalorder %s439_s11, %s524_s12  ;;  %p530_p2 = scmp.lt.s32.totalorder %s524_s12, %s524_s12 }
   0xc   :  { %257 = vperm.xlu1 %519, %v254_v10  }
   0xd   :  { %481 = vmatmul.mubr.msk.f32.gmra.mrb[4].mxu0 %vm55_vm0, %v36_v11  ;;  %p531_p3 = por %p530_p2, %p529_p1 }
   0xf   :  { %343 = vperm.xlu0 %518, %v340_v12   ;;  %p532_p4 = pnand %p531_p3, %p525_p0 }
  0x82   :  { %v43_v14 = vpop.permute.xlu0 %42 }
  0x83   :  { %v53_v24 = vpop.permute.xlu1 %52 }
  0x86   :  { %v48_v18 = vpop.permute.xlu0 %47 }
  0x87   :  { %v158_v34 = vpop.permute.xlu1 %157 }
  0x8a   :  { %v163_v32 = vpop.permute.xlu0 %162 }
  0x8b   :  { %v258_v42 = vpop.permute.xlu1 %257 }
  0x8e   :  { %v344_v48 = vpop.permute.xlu0 %343 }
  0xd8   :  { %v134_v15 = vpop.f32.mrb[0].mxu0 }
  0xd9   :  { %v476_v16 = vpop.f32.mrb[1].mxu0  ;;  %v135_v17 = vadd.f32 %v134_v15, %v43_v14 }
  0xdb   :  { %v148_v22 = vmax.f32 %v135_v17, 0.0 }
  0xdc   :  { %v139_v19 = vpop.f32.mrb[2].mxu0 }
  0xdd   :  { %v140_v20 = vadd.f32 %v139_v19, %v48_v18  ;;  %v479_v21 = vpop.f32.mrb[3].mxu0 }
  0xdf   :  { %v149_v23 = vmax.f32 %v140_v20, 0.0 }
  0xe0   :  { %v144_v25 = vpop.f32.mrb[4].mxu0 }
  0xe1   :  { %v145_v26 = vadd.f32 %v144_v25, %v53_v24  ;;  %v482_v27 = vpop.f32.mrb[5].mxu0  ;;  %v504_v28 = vpack.c.bf16 %v149_v23, %v148_v22 }
  0xe3   :  { %v150_v29 = vmax.f32 %v145_v26, 0.0  ;;  %505 = vmatprep.subr.bf16.mxu1 %v504_v28 }
  0xe4   :  { %507 = vmatpush3.bf16.msra.mxu1 %v504_v28 }
  0xe5   :  { %487 = vmatprep.subr.msk.mxu1 %vm172_vm3, %v150_v29 }
  0xe8   :  { %488 = vmatpush3.msk.msra.mxu1 %vm172_vm3, %v150_v29 }
  0xe9   :  { %490 = vmatmul.mubr.msk.f32.vlgmr.msra.gmra.mrb[0].mxu1 %vm165_vm2, %v152_v30  ;;  %508 = vmatprep.subr.bf16.mxu1 %v551_v31 }
  0xea   :  { %496 = vmatprep.mubr.msk.f32.mxu1 %vm549_vm1, %v548_v1 }
 0x1bc   :  { %v491_v33 = vpop.f32.mrb[0].mxu1 }
 0x1bd   :  { %v248_v35 = vadd.f32 %v491_v33, %v163_v32  ;;  %v242_v36 = vpop.f32.mrb[1].mxu1 }
 0x1be   :  { %v243_v37 = vadd.f32 %v242_v36, %v158_v34 }
 0x1bf   :  { %v252_v38 = vmax.f32 %v248_v35, 0.0 }
 0x1c0   :  { %v251_v39 = vmax.f32 %v243_v37, 0.0 }
 0x1c2   :  { %v509_v40 = vpack.c.bf16 %v252_v38, %v251_v39 }
 0x1c4   :  { %511 = vmatpush3.bf16.msk.msra.mxu1 %vm510_vm6, %v509_v40 }
 0x1c5   :  { %499 = vmatprep.subr.mxu1 %v548_v1 }
 0x1c7   :  { %497 = vmatmul.mubr.msk.f32.vlgmr.msra.gmra.mrb[2].mxu1 %vm260_vm7, %v253_v41 }
 0x1c8   :  { %501 = vmatprep.mubr.msk.f32.mxu1 %vm549_vm1, %v548_v1 }
 0x29a   :  { %v334_v43 = vpop.f32.mrb[2].mxu1 }
 0x29b   :  { %v335_v44 = vadd.f32 %v334_v43, %v258_v42  ;;  %v498_v45 = vpop.f32.mrb[3].mxu1 }
 0x29d   :  { %v338_v46 = vmax.f32 %v335_v44, 0.0 }
 0x29f   :  { %500 = vmatpush3.msk.msra.mxu1 %vm350_vm8, %v338_v46 }
 0x2a0   :  { %502 = vmatmul.mubr.msk.f32.vlgmr.msra.gmra.mrb[4].mxu1 %vm346_vm9, %v339_v47 }
 0x373   :  { %v420_v49 = vpop.f32.mrb[4].mxu1 }
 0x374   :  { %v421_v50 = vadd.f32 %v420_v49, %v344_v48  ;;  %v503_v51 = vpop.f32.mrb[5].mxu1 }
 0x376   :  { %v457_v52 = vmul.f32 -1.442695, %v421_v50 }
 0x378   :  { %520 = vpow2.f32 %v457_v52 }
 0x382   :  { %v521_v53 = vpop.eup %520 }
 0x383   :  { %v427_v54 = vadd.f32 1.0, %v521_v53 }
 0x385   :  { %522 = vrcp.f32 %v427_v54 }
 0x38f   :  { %v523_v55 = vpop.eup %522 }
 0x390   :  { %431 = vst.msk [vmem:[#allocation2] sm:$0x3] %vm430_vm10, %v523_v55 }
 0x391   :  { %535 = shalt.err (!%p532_p4)
}
 0x392   :  { %s536_s14 = scalar_lea.hbm %s688_s9, 32 }
 0x393   :  { %p537_p5 = scmp.ne.s32.totalorder %s688_s9, %s536_s14  ;;  %p540_p6 = scmp.lt.u32.totalorder %s536_s14, %s688_s9 }
 0x395   :  { %p542_p7 = pnand %p540_p6, %p537_p5 }
 0x397   :  { %545 = shalt.err (!%p542_p7)
}
 0x398   :  { %441 = dma.vmem_to_hbm [thread:$0]  %s439_s11, 32, %s688_s9, [#allocation3]  }
 0x399   :  { %546 = dma.done.wait [#allocation3], 32  }
 0x39a   :  { %547 = vsyncadd [#allocation3], 4294967264 }
 0x39b   :  { %445 = vsyncpa [#allocation3], 1 }

</bundles_post_ra>
